<compile_context>
chip_gen: v6e
topology: v6e:2x2x1
jax: 0.10.0
libtpu: 0.0.40
codegen_flags: <defaults>
</compile_context>

<pallas_src>
import functools

import jax
import jax.numpy as jnp
from jax import lax
from jax.experimental import pallas as pl
from jax.experimental.pallas import tpu as pltpu

_C = 10.0          # clipping constant from DP_layer.__init__
_LANE_W = 512      # lane-dense last dim (multiple of 128)
_TILE_ROWS = 256   # 256 x 512 f32 = 512 KiB per buffered block


def _sumsq_kernel(h_ref, ss_ref):
    """Pass 1: streamed global sum-of-squares into a resident (1,1) accumulator."""
    @pl.when(pl.program_id(0) == 0)
    def _init():
        ss_ref[...] = jnp.zeros_like(ss_ref)

    h = h_ref[...]
    ss_ref[...] += jnp.sum(h * h)


def _clip_noise_kernel(inv_ref, h_ref, bits_ref, o_ref, *, lbd):
    """Pass 2: out = h * (1/divisor) + Laplace(0, lbd) noise (elementwise)."""
    inv = inv_ref[0]                     # scalar 1/divisor from SMEM
    h = h_ref[...]

    # Uniform(0,1) via mantissa bit trick: set exponent to 127, random mantissa.
    bits = bits_ref[...]
    mant = (bits >> jnp.uint32(9)) | jnp.uint32(0x3F800000)
    u = lax.bitcast_convert_type(mant, jnp.float32) - 1.0   # [0, 1)
    v = u - 0.5                                             # [-0.5, 0.5)

    # Laplace(0, lbd) inverse CDF; clamp away from 1.0 so log stays finite.
    mag = jnp.minimum(2.0 * jnp.abs(v), 1.0 - 1e-7)
    sgn = jnp.where(v >= 0.0, 1.0, -1.0)                    # no zero point-mass
    noise = (-lbd) * sgn * jnp.log(1.0 - mag)

    o_ref[...] = (h * inv + noise).astype(o_ref.dtype)


def dp_layer(h, *, lbd=1.0, seed=0):
    """Pallas implementation of DP_layer.forward. h: any-shaped float tensor."""
    orig_shape = h.shape
    orig_dtype = h.dtype
    h32 = h.astype(jnp.float32).reshape(-1)
    numel = h32.size

    rows = -(-numel // _LANE_W)
    tr = min(_TILE_ROWS, ((rows + 7) // 8) * 8)          # tile rows, multiple of 8
    padded_rows = ((rows + tr - 1) // tr) * tr
    grid = padded_rows // tr
    padded = padded_rows * _LANE_W

    h_pad = jnp.pad(h32, (0, padded - numel)).reshape(padded_rows, _LANE_W)

    # Raw noise bits from the counter-based JAX PRNG (padded region is discarded).
    bits = jax.random.bits(jax.random.PRNGKey(seed), (padded_rows, _LANE_W),
                           dtype=jnp.uint32)

    # ---- pass 1: global sum of squares (reduction axis -> "arbitrary") ----
    sumsq = pl.pallas_call(
        _sumsq_kernel,
        out_shape=jax.ShapeDtypeStruct((1, 1), jnp.float32),
        grid=(grid,),
        in_specs=[pl.BlockSpec((tr, _LANE_W), lambda i: (i, 0))],
        out_specs=pl.BlockSpec((1, 1), lambda i: (0, 0)),
        compiler_params=pltpu.CompilerParams(
            dimension_semantics=("arbitrary",),
            vmem_limit_bytes=32 * 1024 * 1024),
    )(h_pad)

    # Scalar clipping factor computed once (stays on device).
    l2 = jnp.sqrt(sumsq[0, 0])
    divisor = jnp.maximum(l2 / _C, 1.0)
    inv = (1.0 / divisor).reshape(1).astype(jnp.float32)

    # ---- pass 2: clip + Laplace noise (independent tiles -> "parallel") ----
    out2d = pl.pallas_call(
        functools.partial(_clip_noise_kernel, lbd=float(lbd)),
        out_shape=jax.ShapeDtypeStruct((padded_rows, _LANE_W), jnp.float32),
        grid=(grid,),
        in_specs=[
            pl.BlockSpec(memory_space=pltpu.SMEM),            # inv scalar
            pl.BlockSpec((tr, _LANE_W), lambda i: (i, 0)),    # h tile
            pl.BlockSpec((tr, _LANE_W), lambda i: (i, 0)),    # noise bits tile
        ],
        out_specs=pl.BlockSpec((tr, _LANE_W), lambda i: (i, 0)),
        compiler_params=pltpu.CompilerParams(
            dimension_semantics=("parallel",),
            vmem_limit_bytes=32 * 1024 * 1024),
    )(inv, h_pad, bits)

    out = out2d.reshape(-1)[:numel].reshape(orig_shape)
    return out.astype(orig_dtype)


if __name__ == "__main__":
    key = jax.random.PRNGKey(0)
    # Small NCHW input consistent with a conv-style feature map.
    x = jax.random.normal(key, (2, 4, 16, 16), dtype=jnp.float32) * 3.0

    out = dp_layer(x, lbd=1.0, seed=1234)
    out = jax.block_until_ready(out)

    # Sanity checks: shape/dtype preserved, values finite.
    assert out.shape == x.shape and out.dtype == jnp.float32
    assert bool(jnp.all(jnp.isfinite(out)))

    # Reference check of the deterministic (clipping) part in plain JAX.
    l2 = jnp.linalg.norm(x.reshape(-1))
    divisor = jnp.maximum(l2 / 10.0, 1.0)
    h_clipped = x / divisor
    # out - h_clipped should be Laplace(0, 1) noise: finite, mean near 0.
    resid = out - h_clipped
    assert bool(jnp.all(jnp.isfinite(resid)))
    assert abs(float(jnp.mean(resid))) < 0.5  # loose statistical sanity bound

    print("KERNEL_OK")
</pallas_src>

<mosaic_0001>
module attributes {stable_mosaic.version = 11 : i64} {
  func.func @_sumsq_kernel(%arg0: i32, %arg1: memref<8x512xf32, #tpu.memory_space<vmem>>, %arg2: memref<1x1xf32, #tpu.memory_space<vmem>>) attributes {dimension_semantics = [#tpu.dimension_semantics<arbitrary>], iteration_bounds = array<i64: 1>, scalar_prefetch = 0 : i64, scratch_operands = 0 : i64, tpu.core_type = #tpu.core_type<tc>, window_params = [{transform_indices = @transform_0, window_bounds = array<i64: 8, 512>}, {pipeline_mode = #tpu.pipeline_mode<synchronous>, transform_indices = @transform_1, window_bounds = array<i64: 1, 1>}]} {
    %c0_i32 = arith.constant 0 : i32
    %0 = arith.cmpi eq, %arg0, %c0_i32 : i32
    %1 = arith.extui %0 : i1 to i32
    %c0_i32_0 = arith.constant 0 : i32
    %2 = arith.cmpi ne, %1, %c0_i32_0 : i32
    scf.if %2 {
      %cst_6 = arith.constant 0.000000e+00 : f32
      %13 = vector.broadcast %cst_6 : f32 to vector<1x1xf32>
      %c0_7 = arith.constant 0 : index
      %c0_8 = arith.constant 0 : index
      %14 = vector.load %arg2[%c0_7, %c0_8] : memref<1x1xf32, #tpu.memory_space<vmem>>, vector<1x1xf32>
      tpu.vector_store %arg2[%c0_7, %c0_8], %13 {strides = array<i32>} : memref<1x1xf32, #tpu.memory_space<vmem>>, vector<1x1xf32>,
    } else {
    }
    %c0 = arith.constant 0 : index
    %c0_1 = arith.constant 0 : index
    %3 = vector.load %arg1[%c0, %c0_1] : memref<8x512xf32, #tpu.memory_space<vmem>>, vector<8x512xf32>
    %c0_2 = arith.constant 0 : index
    %c0_3 = arith.constant 0 : index
    %4 = vector.load %arg2[%c0_2, %c0_3] : memref<1x1xf32, #tpu.memory_space<vmem>>, vector<1x1xf32>
    %5 = arith.mulf %3, %3 : vector<8x512xf32>
    %6 = vector.shape_cast %5 : vector<8x512xf32> to vector<1x8x512xf32>
    %cst = arith.constant dense<0.000000e+00> : vector<1xf32>
    %7 = vector.multi_reduction <add>, %6, %cst [1, 2] : vector<1x8x512xf32> to vector<1xf32>
    %8 = vector.shape_cast %7 : vector<1xf32> to vector<1x1x1xf32>
    %9 = vector.extract %8[0, 0, 0] : f32 from vector<1x1x1xf32>
    %10 = vector.broadcast %9 : f32 to vector<1x1xf32>
    %11 = arith.addf %4, %10 : vector<1x1xf32>
    %c0_4 = arith.constant 0 : index
    %c0_5 = arith.constant 0 : index
    %12 = vector.load %arg2[%c0_4, %c0_5] : memref<1x1xf32, #tpu.memory_space<vmem>>, vector<1x1xf32>
    tpu.vector_store %arg2[%c0_4, %c0_5], %11 {strides = array<i32>} : memref<1x1xf32, #tpu.memory_space<vmem>>, vector<1x1xf32>,
    return
  }
  func.func @transform_0(%arg0: i32) -> (i32, i32) {
    %c0_i32 = arith.constant 0 : i32
    %c0_i32_0 = arith.constant 0 : i32
    return %arg0, %c0_i32 : i32, i32
  }
  func.func @transform_1(%arg0: i32) -> (i32, i32) {
    %c0_i32 = arith.constant 0 : i32
    %c0_i32_0 = arith.constant 0 : i32
    %c0_i32_1 = arith.constant 0 : i32
    return %c0_i32, %c0_i32_0 : i32, i32
  }
}

</mosaic_0001>

<bundles_post_ra>
// kernel: tpu_custom_call.1
= control target key start
LH: loop header
LB: loop body
LE: loop exit
PB: predicated region body
PF: predicated region fallthrough
CT: control target
= control target key end

     0   :  { %6 = vsyncpa [#allocation3], 0  ;;  %s137_s0 = inlined_call_operand.hbm [shape: f32[8,512], index: 0, kind: input, shape index: {}]   ;;  %s138_s1 = inlined_call_operand.hbm [shape: f32[1,1], index: 1, kind: output, shape index: {}]  }
   0x1   :  { %7 = vsyncpa [#allocation4], 0  ;;  %s116_s6 = smov [#allocation2]  }
   0x2   :  { %s14_s7 = sshll.u32 %s116_s6, 4  ;;  %s15_s7 = int_to_ptr.vmem [resolvable:$true] %s14_s7 }
   0x3   :  { %s80_s8 = scalar_lea.vmem %s15_s7, 512  ;;  %p85_p1 = scmp.lt.s32.totalorder %s15_s7, %s15_s7 }
   0x4   :  { %p81_p0 = scmp.ne.s32.totalorder %s15_s7, %s80_s8  ;;  %p86_p2 = scmp.lt.s32.totalorder %s80_s8, %s80_s8 }
   0x6   :  { %p87_p3 = por %p86_p2, %p85_p1 }
   0x8   :  { %p88_p4 = pnand %p87_p3, %p81_p0 }
   0xa   :  { %91 = shalt.err (!%p88_p4)
}
   0xb   :  { %17 = dma.hbm_to_vmem [thread:$0]  %s137_s0, 512, %s15_s7, [#allocation3]  }
   0xc   :  { %112 = dma.done.wait [#allocation3], 512  }
   0xd   :  { %113 = vsyncadd [#allocation3], 4294966784  ;;  %vm25_vm0 = vcmask 0   ;;  %v117_v0 = vmov 0.0   ;;  %v27_v1 = vld [vmem:[#allocation2] sm:$0xff]  ;;  %v28_v2 = vld [vmem:[#allocation2 + $0x8] sm:$0xff] }
   0xe   :  { %26 = vst.msk [vmem:[#allocation5] sm:$0x1] %vm25_vm0, %v117_v0  ;;  %v29_v3 = vld [vmem:[#allocation2 + $0x10] sm:$0xff]  ;;  %v30_v4 = vld [vmem:[#allocation2 + $0x18] sm:$0xff]  ;;  %v32_v5 = vmul.f32 %v27_v1, %v27_v1  ;;  %v33_v6 = vmul.f32 %v28_v2, %v28_v2  ;;  %s118_s0 = smov [#allocation5]  }
   0xf   :  { %v34_v7 = vmul.f32 %v29_v3, %v29_v3  ;;  %v35_v8 = vmul.f32 %v30_v4, %v30_v4  ;;  %s58_s11 = sshll.u32 %s118_s0, 4  ;;  %s59_s11 = int_to_ptr.vmem [resolvable:$true] %s58_s11 }
  0x10   :  { %v36_v9 = vadd.f32 %v33_v6, %v32_v5  ;;  %s92_s13 = scalar_lea.vmem %s59_s11, 16  ;;  %s96_s14 = scalar_lea.vmem %s59_s11, 32 }
  0x11   :  { %p93_p5 = scmp.ne.s32.totalorder %s59_s11, %s92_s13  ;;  %p97_p6 = scmp.lt.s32.totalorder %s59_s11, %s59_s11 }
  0x12   :  { %v37_v10 = vadd.f32 %v36_v9, %v34_v7  ;;  %p98_p7 = scmp.lt.s32.totalorder %s96_s14, %s92_s13 }
  0x14   :  { %v38_v11 = vadd.f32 %v37_v10, %v35_v8  ;;  %p99_p8 = por %p98_p7, %p97_p6 }
  0x15   :  { %v31_v19 = vld [vmem:[#allocation5] sm:$0x1] }
  0x16   :  { %39 = vadd.xlane.f32.xlu0 %v38_v11  ;;  %p100_p9 = pnand %p99_p8, %p93_p5 }
  0x9f   :  { %v40_v12 = vpop.xlane.xlu0 %39 }
  0xa0   :  { %v41_v13 = vrot.slane %v40_v12, 4 }
  0xa2   :  { %v42_v14 = vadd.f32 %v41_v13, %v40_v12 }
  0xa4   :  { %v43_v15 = vrot.slane %v42_v14, 2 }
  0xa6   :  { %v44_v16 = vadd.f32 %v43_v15, %v42_v14 }
  0xa8   :  { %v45_v17 = vrot.slane %v44_v16, 1 }
  0xaa   :  { %v46_v18 = vadd.f32 %v45_v17, %v44_v16 }
  0xac   :  { %67 = vpush %v46_v18 }
  0xdd   :  { %s68_s12 = spop %67 }
  0xde   :  { %v48_v20 = vstv %s68_s12 }
  0xdf   :  { %v49_v21 = vadd.f32 %v48_v20, %v31_v19 }
  0xe1   :  { %51 = vst.msk [vmem:[#allocation5] sm:$0x1] %vm25_vm0, %v49_v21 }
  0xe2   :  { %103 = shalt.err (!%p100_p9)
}
  0xe3   :  { %61 = dma.vmem_to_hbm [thread:$0]  %s59_s11, 16, %s138_s1, [#allocation4]  }
  0xe4   :  { %114 = dma.done.wait [#allocation4], 16  }
  0xe5   :  { %115 = vsyncadd [#allocation4], 4294967280 }
  0xe6   :  { %65 = vsyncpa [#allocation3], 1 }
  0xe7   :  { %66 = vsyncpa [#allocation4], 1 }

</bundles_post_ra>
